<compile_context>
chip_gen: v6e
topology: v6e:2x2x1
jax: 0.10.0
libtpu: 0.0.40
codegen_flags: <defaults>
</compile_context>

<pallas_src>
import jax
import jax.numpy as jnp
from jax.experimental import pallas as pl
from jax.experimental.pallas import tpu as pltpu

LN_EPS = 1e-12  # eps used by get_norm_layer for the embedding LayerNorm


def _round_up(x, m):
    return (x + m - 1) // m * m


def _embed_ln_kernel(ids_ref, table_ref, w_ref, b_ref, out_ref, xu_ref):
    # ids_ref   : (N_pad,) int32, scalar-prefetched token ids in SMEM
    # table_ref : (V, H//2) uint32 packed bf16 table, VMEM-resident (Buffered(1))
    #             low 16 bits  = column j        (first half of hidden dim)
    #             high 16 bits = column j + H//2 (second half of hidden dim)
    # w_ref/b_ref: (1, H) f32 LayerNorm scale / shift (resident)
    # out_ref   : (TILE, H) output block
    # xu_ref    : (TILE, H//2) uint32 staging block for the gathered packed rows
    tile, h2 = xu_ref.shape
    h = 2 * h2
    base = pl.program_id(0) * tile

    # ---- gather: TILE dynamic 32-bit row reads from the resident table ------
    def gather8(t8, carry):
        t0 = pl.multiple_of(t8 * 8, 8)
        for u in range(8):  # 8 rows per loop body (tile is a multiple of 8)
            t = t0 + u
            tok = ids_ref[base + t]
            xu_ref[pl.ds(t, 1), :] = table_ref[pl.ds(tok, 1), :]
        return carry

    n_groups = tile // 8
    if n_groups <= 16:
        unroll = True
    elif n_groups % 4 == 0:
        unroll = 4
    elif n_groups % 2 == 0:
        unroll = 2
    else:
        unroll = 1
    jax.lax.fori_loop(0, n_groups, gather8, 0, unroll=unroll)

    # ---- unpack packed bf16 halves to f32 (bf16 bits are the top 16 of f32) --
    xu = xu_ref[...]                                              # (tile, h2) u32
    x_lo = pltpu.bitcast(jnp.left_shift(xu, jnp.uint32(16)), jnp.float32)
    x_hi = pltpu.bitcast(jnp.bitwise_and(xu, jnp.uint32(0xFFFF0000)), jnp.float32)

    # ---- fused LayerNorm (two-pass variance, f32 math) -----------------------
    inv_h = 1.0 / h
    mean = (jnp.sum(x_lo, axis=-1, keepdims=True)
            + jnp.sum(x_hi, axis=-1, keepdims=True)) * inv_h
    xc_lo = x_lo - mean
    xc_hi = x_hi - mean
    var = (jnp.sum(xc_lo * xc_lo, axis=-1, keepdims=True)
           + jnp.sum(xc_hi * xc_hi, axis=-1, keepdims=True)) * inv_h
    inv = jax.lax.rsqrt(var + LN_EPS)                             # EUP

    w = w_ref[...].astype(jnp.float32)                            # (1, H)
    b = b_ref[...].astype(jnp.float32)
    out_ref[:, :h2] = (xc_lo * inv * w[:, :h2] + b[:, :h2]).astype(out_ref.dtype)
    out_ref[:, h2:] = (xc_hi * inv * w[:, h2:] + b[:, h2:]).astype(out_ref.dtype)


def flexbert_sans_position_embeddings(
    input_ids, tok_embeddings, ln_weight, ln_bias, *, tile_tokens=512, out_dtype=jnp.float32
):
    """Pallas forward: drop(norm(tok_embeddings(input_ids))).

    input_ids: (B, S) integer token ids
    tok_embeddings: (V, H) embedding table (pad row already zeroed, matching padding_idx)
    ln_weight, ln_bias: (H,)
    returns: (B, S, H) in `out_dtype` (pass jnp.bfloat16 if the encoder consumes bf16:
             halves the HBM writeback, which dominates once the table is resident).

    Note: per the perf review the table is held at bf16 precision in VMEM
    (LayerNorm math stays f32 inside the kernel).
    """
    B, S = input_ids.shape
    V, H = tok_embeddings.shape
    assert H % 2 == 0, "hidden_size must be even"
    h2 = H // 2
    N = B * S

    # Tile over tokens; keep the sublane extent a multiple of 8.
    tile = _round_up(min(int(tile_tokens), _round_up(N, 8)), 8)
    n_pad = _round_up(N, tile)
    n_tiles = n_pad // tile

    # Clip ids (VMEM refs have no runtime OOB check) and pad with id 0.
    ids_flat = jnp.clip(input_ids.reshape(N).astype(jnp.int32), 0, V - 1)
    if n_pad != N:
        ids_flat = jnp.concatenate([ids_flat, jnp.zeros((n_pad - N,), jnp.int32)])
    # TODO(synk): for very long B*S, pass ids as per-tile SMEM blocks instead of
    # scalar-prefetching the whole flat array, to bound SMEM usage.

    # bf16-quantize the table and pack two values per u32: (col j | col j+H/2).
    tb = tok_embeddings.astype(jnp.bfloat16)
    lo = jax.lax.bitcast_convert_type(tb[:, :h2], jnp.uint16).astype(jnp.uint32)
    hi = jax.lax.bitcast_convert_type(tb[:, h2:], jnp.uint16).astype(jnp.uint32)
    table_packed = jnp.bitwise_or(jnp.left_shift(hi, jnp.uint32(16)), lo)  # (V, H//2) u32
    # TODO(synk): for bit-exact f32 table semantics, or vocabs too large for VMEM even
    # at bf16, switch the table spec to memory_space=pl.ANY and gather rows from HBM
    # with a manually double-buffered pltpu.make_async_copy pipeline.

    w2d = ln_weight.reshape(1, H).astype(jnp.float32)
    b2d = ln_bias.reshape(1, H).astype(jnp.float32)

    # Generation-aware VMEM budget: 1x packed table (Buffered(1)), double-buffered
    # output blocks, half-width u32 staging block, small headroom.
    out_itemsize = jnp.dtype(out_dtype).itemsize
    table_bytes = V * h2 * 4
    needed = table_bytes + 2 * tile * H * out_itemsize + tile * h2 * 4 + (2 << 20)
    try:
        vmem_cap = int(pltpu.get_tpu_info().vmem_capacity_bytes)
    except Exception:
        vmem_cap = 64 << 20  # conservative (v7x per-TC VMEM)
    vmem_limit = int(min(max(needed, 32 << 20), vmem_cap - (2 << 20)))

    grid_spec = pltpu.PrefetchScalarGridSpec(
        num_scalar_prefetch=1,
        grid=(n_tiles,),
        in_specs=[
            # Constant-index (fetched once) -> single-buffer them.
            pl.BlockSpec((V, h2), lambda i, ids: (0, 0),
                         pipeline_mode=pl.Buffered(buffer_count=1)),
            pl.BlockSpec((1, H), lambda i, ids: (0, 0),
                         pipeline_mode=pl.Buffered(buffer_count=1)),
            pl.BlockSpec((1, H), lambda i, ids: (0, 0),
                         pipeline_mode=pl.Buffered(buffer_count=1)),
        ],
        out_specs=pl.BlockSpec((tile, H), lambda i, ids: (i, 0)),
        scratch_shapes=[pltpu.VMEM((tile, h2), jnp.uint32)],
    )

    out = pl.pallas_call(
        _embed_ln_kernel,
        out_shape=jax.ShapeDtypeStruct((n_pad, H), out_dtype),
        grid_spec=grid_spec,
        compiler_params=pltpu.CompilerParams(
            dimension_semantics=("parallel",),   # tiles independent -> megacore on v7x
            vmem_limit_bytes=vmem_limit,
        ),
    )(ids_flat, table_packed, w2d, b2d)

    # Dropout: embed_dropout_prob == 0.0 (or eval mode) -> identity.
    return out[:N].reshape(B, S, H)


def _reference(input_ids, tok_embeddings, ln_weight, ln_bias):
    # Mirrors the kernel: bf16-quantized table values, f32 LayerNorm math.
    tb = tok_embeddings.astype(jnp.bfloat16).astype(jnp.float32)
    x = tb[input_ids]                                            # (B, S, H)
    mean = jnp.mean(x, axis=-1, keepdims=True)
    var = jnp.mean((x - mean) ** 2, axis=-1, keepdims=True)
    return (x - mean) * jax.lax.rsqrt(var + LN_EPS) * ln_weight + ln_bias


if __name__ == "__main__":
    # Small config consistent with the module's __init__:
    vocab_size = 32
    hidden_size = 128
    pad_token_id = 0
    batch, seq = 2, 8

    key = jax.random.PRNGKey(0)
    k_emb, k_ids = jax.random.split(key)

    # Deterministic synthetic parameters (init_weights analogue).
    tok_embeddings = 0.02 * jax.random.normal(
        k_emb, (vocab_size, hidden_size), dtype=jnp.float32
    )
    # nn.Embedding(padding_idx=pad_token_id) zeroes the pad row at init.
    tok_embeddings = tok_embeddings.at[pad_token_id].set(0.0)

    ln_weight = 1.0 + 0.01 * jnp.arange(hidden_size, dtype=jnp.float32)
    ln_bias = 0.001 * jnp.arange(hidden_size, dtype=jnp.float32)

    input_ids = jax.random.randint(
        k_ids, (batch, seq), minval=0, maxval=vocab_size, dtype=jnp.int32
    )

    out = flexbert_sans_position_embeddings(
        input_ids, tok_embeddings, ln_weight, ln_bias
    )
    out = jax.block_until_ready(out)

    ref = _reference(input_ids, tok_embeddings, ln_weight, ln_bias)
    assert out.shape == (batch, seq, hidden_size)
    assert jnp.allclose(out, ref, atol=1e-5, rtol=1e-5), "mismatch vs reference"

    print("KERNEL_OK")
</pallas_src>

<mosaic_0001>
module attributes {stable_mosaic.version = 11 : i64} {
  func.func @_embed_ln_kernel(%arg0: i32, %arg1: memref<16xi32, #tpu.memory_space<smem>>, %arg2: memref<32x64xi32, #tpu.memory_space<vmem>>, %arg3: memref<1x128xf32, #tpu.memory_space<vmem>>, %arg4: memref<1x128xf32, #tpu.memory_space<vmem>>, %arg5: memref<16x128xf32, #tpu.memory_space<vmem>>, %arg6: memref<16x64xi32, #tpu.memory_space<vmem>>) attributes {dimension_semantics = [#tpu.dimension_semantics<parallel>], iteration_bounds = array<i64: 1>, scalar_prefetch = 1 : i64, scratch_operands = 1 : i64, tpu.core_type = #tpu.core_type<tc>, window_params = [{pipeline_mode = #tpu.pipeline_mode<synchronous>, transform_indices = @transform_0, window_bounds = array<i64: 32, 64>}, {pipeline_mode = #tpu.pipeline_mode<synchronous>, transform_indices = @transform_1, window_bounds = array<i64: 1, 128>}, {pipeline_mode = #tpu.pipeline_mode<synchronous>, transform_indices = @transform_2, window_bounds = array<i64: 1, 128>}, {transform_indices = @transform_3, window_bounds = array<i64: 16, 128>}]} {
    %c16_i32 = arith.constant 16 : i32
    %0 = arith.muli %arg0, %c16_i32 : i32
    %c0_i32 = arith.constant 0 : i32
    %c8_i32 = arith.constant 8 : i32
    %1 = arith.muli %c0_i32, %c8_i32 : i32
    %2 = tpu.assume_multiple %1, 8 : i32
    %c0_i32_0 = arith.constant 0 : i32
    %3 = arith.addi %2, %c0_i32_0 : i32
    %4 = arith.addi %0, %3 : i32
    %5 = arith.index_cast %4 : i32 to index
    %6 = memref.load %arg1[%5] : memref<16xi32, #tpu.memory_space<smem>>
    %7 = arith.index_cast %6 : i32 to index
    %c0 = arith.constant 0 : index
    %8 = vector.load %arg2[%7, %c0] : memref<32x64xi32, #tpu.memory_space<vmem>>, vector<1x64xi32>
    %9 = arith.index_cast %3 : i32 to index
    %c0_1 = arith.constant 0 : index
    %10 = vector.load %arg6[%9, %c0_1] : memref<16x64xi32, #tpu.memory_space<vmem>>, vector<1x64xi32>
    tpu.vector_store %arg6[%9, %c0_1], %8 {strides = array<i32>} : memref<16x64xi32, #tpu.memory_space<vmem>>, vector<1x64xi32>,
    %c1_i32 = arith.constant 1 : i32
    %11 = arith.addi %2, %c1_i32 : i32
    %12 = arith.addi %0, %11 : i32
    %13 = arith.index_cast %12 : i32 to index
    %14 = memref.load %arg1[%13] : memref<16xi32, #tpu.memory_space<smem>>
    %15 = arith.index_cast %14 : i32 to index
    %c0_2 = arith.constant 0 : index
    %16 = vector.load %arg2[%15, %c0_2] : memref<32x64xi32, #tpu.memory_space<vmem>>, vector<1x64xi32>
    %17 = arith.index_cast %11 : i32 to index
    %c0_3 = arith.constant 0 : index
    %18 = vector.load %arg6[%17, %c0_3] : memref<16x64xi32, #tpu.memory_space<vmem>>, vector<1x64xi32>
    tpu.vector_store %arg6[%17, %c0_3], %16 {strides = array<i32>} : memref<16x64xi32, #tpu.memory_space<vmem>>, vector<1x64xi32>,
    %c2_i32 = arith.constant 2 : i32
    %19 = arith.addi %2, %c2_i32 : i32
    %20 = arith.addi %0, %19 : i32
    %21 = arith.index_cast %20 : i32 to index
    %22 = memref.load %arg1[%21] : memref<16xi32, #tpu.memory_space<smem>>
    %23 = arith.index_cast %22 : i32 to index
    %c0_4 = arith.constant 0 : index
    %24 = vector.load %arg2[%23, %c0_4] : memref<32x64xi32, #tpu.memory_space<vmem>>, vector<1x64xi32>
    %25 = arith.index_cast %19 : i32 to index
    %c0_5 = arith.constant 0 : index
    %26 = vector.load %arg6[%25, %c0_5] : memref<16x64xi32, #tpu.memory_space<vmem>>, vector<1x64xi32>
    tpu.vector_store %arg6[%25, %c0_5], %24 {strides = array<i32>} : memref<16x64xi32, #tpu.memory_space<vmem>>, vector<1x64xi32>,
    %c3_i32 = arith.constant 3 : i32
    %27 = arith.addi %2, %c3_i32 : i32
    %28 = arith.addi %0, %27 : i32
    %29 = arith.index_cast %28 : i32 to index
    %30 = memref.load %arg1[%29] : memref<16xi32, #tpu.memory_space<smem>>
    %31 = arith.index_cast %30 : i32 to index
    %c0_6 = arith.constant 0 : index
    %32 = vector.load %arg2[%31, %c0_6] : memref<32x64xi32, #tpu.memory_space<vmem>>, vector<1x64xi32>
    %33 = arith.index_cast %27 : i32 to index
    %c0_7 = arith.constant 0 : index
    %34 = vector.load %arg6[%33, %c0_7] : memref<16x64xi32, #tpu.memory_space<vmem>>, vector<1x64xi32>
    tpu.vector_store %arg6[%33, %c0_7], %32 {strides = array<i32>} : memref<16x64xi32, #tpu.memory_space<vmem>>, vector<1x64xi32>,
    %c4_i32 = arith.constant 4 : i32
    %35 = arith.addi %2, %c4_i32 : i32
    %36 = arith.addi %0, %35 : i32
    %37 = arith.index_cast %36 : i32 to index
    %38 = memref.load %arg1[%37] : memref<16xi32, #tpu.memory_space<smem>>
    %39 = arith.index_cast %38 : i32 to index
    %c0_8 = arith.constant 0 : index
    %40 = vector.load %arg2[%39, %c0_8] : memref<32x64xi32, #tpu.memory_space<vmem>>, vector<1x64xi32>
    %41 = arith.index_cast %35 : i32 to index
    %c0_9 = arith.constant 0 : index
    %42 = vector.load %arg6[%41, %c0_9] : memref<16x64xi32, #tpu.memory_space<vmem>>, vector<1x64xi32>
    tpu.vector_store %arg6[%41, %c0_9], %40 {strides = array<i32>} : memref<16x64xi32, #tpu.memory_space<vmem>>, vector<1x64xi32>,
    %c5_i32 = arith.constant 5 : i32
    %43 = arith.addi %2, %c5_i32 : i32
    %44 = arith.addi %0, %43 : i32
    %45 = arith.index_cast %44 : i32 to index
    %46 = memref.load %arg1[%45] : memref<16xi32, #tpu.memory_space<smem>>
    %47 = arith.index_cast %46 : i32 to index
    %c0_10 = arith.constant 0 : index
    %48 = vector.load %arg2[%47, %c0_10] : memref<32x64xi32, #tpu.memory_space<vmem>>, vector<1x64xi32>
    %49 = arith.index_cast %43 : i32 to index
    %c0_11 = arith.constant 0 : index
    %50 = vector.load %arg6[%49, %c0_11] : memref<16x64xi32, #tpu.memory_space<vmem>>, vector<1x64xi32>
    tpu.vector_store %arg6[%49, %c0_11], %48 {strides = array<i32>} : memref<16x64xi32, #tpu.memory_space<vmem>>, vector<1x64xi32>,
    %c6_i32 = arith.constant 6 : i32
    %51 = arith.addi %2, %c6_i32 : i32
    %52 = arith.addi %0, %51 : i32
    %53 = arith.index_cast %52 : i32 to index
    %54 = memref.load %arg1[%53] : memref<16xi32, #tpu.memory_space<smem>>
    %55 = arith.index_cast %54 : i32 to index
    %c0_12 = arith.constant 0 : index
    %56 = vector.load %arg2[%55, %c0_12] : memref<32x64xi32, #tpu.memory_space<vmem>>, vector<1x64xi32>
    %57 = arith.index_cast %51 : i32 to index
    %c0_13 = arith.constant 0 : index
    %58 = vector.load %arg6[%57, %c0_13] : memref<16x64xi32, #tpu.memory_space<vmem>>, vector<1x64xi32>
    tpu.vector_store %arg6[%57, %c0_13], %56 {strides = array<i32>} : memref<16x64xi32, #tpu.memory_space<vmem>>, vector<1x64xi32>,
    %c7_i32 = arith.constant 7 : i32
    %59 = arith.addi %2, %c7_i32 : i32
    %60 = arith.addi %0, %59 : i32
    %61 = arith.index_cast %60 : i32 to index
    %62 = memref.load %arg1[%61] : memref<16xi32, #tpu.memory_space<smem>>
    %63 = arith.index_cast %62 : i32 to index
    %c0_14 = arith.constant 0 : index
    %64 = vector.load %arg2[%63, %c0_14] : memref<32x64xi32, #tpu.memory_space<vmem>>, vector<1x64xi32>
    %65 = arith.index_cast %59 : i32 to index
    %c0_15 = arith.constant 0 : index
    %66 = vector.load %arg6[%65, %c0_15] : memref<16x64xi32, #tpu.memory_space<vmem>>, vector<1x64xi32>
    tpu.vector_store %arg6[%65, %c0_15], %64 {strides = array<i32>} : memref<16x64xi32, #tpu.memory_space<vmem>>, vector<1x64xi32>,
    %c1_i32_16 = arith.constant 1 : i32
    %c8_i32_17 = arith.constant 8 : i32
    %67 = arith.muli %c1_i32_16, %c8_i32_17 : i32
    %68 = tpu.assume_multiple %67, 8 : i32
    %c0_i32_18 = arith.constant 0 : i32
    %69 = arith.addi %68, %c0_i32_18 : i32
    %70 = arith.addi %0, %69 : i32
    %71 = arith.index_cast %70 : i32 to index
    %72 = memref.load %arg1[%71] : memref<16xi32, #tpu.memory_space<smem>>
    %73 = arith.index_cast %72 : i32 to index
    %c0_19 = arith.constant 0 : index
    %74 = vector.load %arg2[%73, %c0_19] : memref<32x64xi32, #tpu.memory_space<vmem>>, vector<1x64xi32>
    %75 = arith.index_cast %69 : i32 to index
    %c0_20 = arith.constant 0 : index
    %76 = vector.load %arg6[%75, %c0_20] : memref<16x64xi32, #tpu.memory_space<vmem>>, vector<1x64xi32>
    tpu.vector_store %arg6[%75, %c0_20], %74 {strides = array<i32>} : memref<16x64xi32, #tpu.memory_space<vmem>>, vector<1x64xi32>,
    %c1_i32_21 = arith.constant 1 : i32
    %77 = arith.addi %68, %c1_i32_21 : i32
    %78 = arith.addi %0, %77 : i32
    %79 = arith.index_cast %78 : i32 to index
    %80 = memref.load %arg1[%79] : memref<16xi32, #tpu.memory_space<smem>>
    %81 = arith.index_cast %80 : i32 to index
    %c0_22 = arith.constant 0 : index
    %82 = vector.load %arg2[%81, %c0_22] : memref<32x64xi32, #tpu.memory_space<vmem>>, vector<1x64xi32>
    %83 = arith.index_cast %77 : i32 to index
    %c0_23 = arith.constant 0 : index
    %84 = vector.load %arg6[%83, %c0_23] : memref<16x64xi32, #tpu.memory_space<vmem>>, vector<1x64xi32>
    tpu.vector_store %arg6[%83, %c0_23], %82 {strides = array<i32>} : memref<16x64xi32, #tpu.memory_space<vmem>>, vector<1x64xi32>,
    %c2_i32_24 = arith.constant 2 : i32
    %85 = arith.addi %68, %c2_i32_24 : i32
    %86 = arith.addi %0, %85 : i32
    %87 = arith.index_cast %86 : i32 to index
    %88 = memref.load %arg1[%87] : memref<16xi32, #tpu.memory_space<smem>>
    %89 = arith.index_cast %88 : i32 to index
    %c0_25 = arith.constant 0 : index
    %90 = vector.load %arg2[%89, %c0_25] : memref<32x64xi32, #tpu.memory_space<vmem>>, vector<1x64xi32>
    %91 = arith.index_cast %85 : i32 to index
    %c0_26 = arith.constant 0 : index
    %92 = vector.load %arg6[%91, %c0_26] : memref<16x64xi32, #tpu.memory_space<vmem>>, vector<1x64xi32>
    tpu.vector_store %arg6[%91, %c0_26], %90 {strides = array<i32>} : memref<16x64xi32, #tpu.memory_space<vmem>>, vector<1x64xi32>,
    %c3_i32_27 = arith.constant 3 : i32
    %93 = arith.addi %68, %c3_i32_27 : i32
    %94 = arith.addi %0, %93 : i32
    %95 = arith.index_cast %94 : i32 to index
    %96 = memref.load %arg1[%95] : memref<16xi32, #tpu.memory_space<smem>>
    %97 = arith.index_cast %96 : i32 to index
    %c0_28 = arith.constant 0 : index
    %98 = vector.load %arg2[%97, %c0_28] : memref<32x64xi32, #tpu.memory_space<vmem>>, vector<1x64xi32>
    %99 = arith.index_cast %93 : i32 to index
    %c0_29 = arith.constant 0 : index
    %100 = vector.load %arg6[%99, %c0_29] : memref<16x64xi32, #tpu.memory_space<vmem>>, vector<1x64xi32>
    tpu.vector_store %arg6[%99, %c0_29], %98 {strides = array<i32>} : memref<16x64xi32, #tpu.memory_space<vmem>>, vector<1x64xi32>,
    %c4_i32_30 = arith.constant 4 : i32
    %101 = arith.addi %68, %c4_i32_30 : i32
    %102 = arith.addi %0, %101 : i32
    %103 = arith.index_cast %102 : i32 to index
    %104 = memref.load %arg1[%103] : memref<16xi32, #tpu.memory_space<smem>>
    %105 = arith.index_cast %104 : i32 to index
    %c0_31 = arith.constant 0 : index
    %106 = vector.load %arg2[%105, %c0_31] : memref<32x64xi32, #tpu.memory_space<vmem>>, vector<1x64xi32>
    %107 = arith.index_cast %101 : i32 to index
    %c0_32 = arith.constant 0 : index
    %108 = vector.load %arg6[%107, %c0_32] : memref<16x64xi32, #tpu.memory_space<vmem>>, vector<1x64xi32>
    tpu.vector_store %arg6[%107, %c0_32], %106 {strides = array<i32>} : memref<16x64xi32, #tpu.memory_space<vmem>>, vector<1x64xi32>,
    %c5_i32_33 = arith.constant 5 : i32
    %109 = arith.addi %68, %c5_i32_33 : i32
    %110 = arith.addi %0, %109 : i32
    %111 = arith.index_cast %110 : i32 to index
    %112 = memref.load %arg1[%111] : memref<16xi32, #tpu.memory_space<smem>>
    %113 = arith.index_cast %112 : i32 to index
    %c0_34 = arith.constant 0 : index
    %114 = vector.load %arg2[%113, %c0_34] : memref<32x64xi32, #tpu.memory_space<vmem>>, vector<1x64xi32>
    %115 = arith.index_cast %109 : i32 to index
    %c0_35 = arith.constant 0 : index
    %116 = vector.load %arg6[%115, %c0_35] : memref<16x64xi32, #tpu.memory_space<vmem>>, vector<1x64xi32>
    tpu.vector_store %arg6[%115, %c0_35], %114 {strides = array<i32>} : memref<16x64xi32, #tpu.memory_space<vmem>>, vector<1x64xi32>,
    %c6_i32_36 = arith.constant 6 : i32
    %117 = arith.addi %68, %c6_i32_36 : i32
    %118 = arith.addi %0, %117 : i32
    %119 = arith.index_cast %118 : i32 to index
    %120 = memref.load %arg1[%119] : memref<16xi32, #tpu.memory_space<smem>>
    %121 = arith.index_cast %120 : i32 to index
    %c0_37 = arith.constant 0 : index
    %122 = vector.load %arg2[%121, %c0_37] : memref<32x64xi32, #tpu.memory_space<vmem>>, vector<1x64xi32>
    %123 = arith.index_cast %117 : i32 to index
    %c0_38 = arith.constant 0 : index
    %124 = vector.load %arg6[%123, %c0_38] : memref<16x64xi32, #tpu.memory_space<vmem>>, vector<1x64xi32>
    tpu.vector_store %arg6[%123, %c0_38], %122 {strides = array<i32>} : memref<16x64xi32, #tpu.memory_space<vmem>>, vector<1x64xi32>,
    %c7_i32_39 = arith.constant 7 : i32
    %125 = arith.addi %68, %c7_i32_39 : i32
    %126 = arith.addi %0, %125 : i32
    %127 = arith.index_cast %126 : i32 to index
    %128 = memref.load %arg1[%127] : memref<16xi32, #tpu.memory_space<smem>>
    %129 = arith.index_cast %128 : i32 to index
    %c0_40 = arith.constant 0 : index
    %130 = vector.load %arg2[%129, %c0_40] : memref<32x64xi32, #tpu.memory_space<vmem>>, vector<1x64xi32>
    %131 = arith.index_cast %125 : i32 to index
    %c0_41 = arith.constant 0 : index
    %132 = vector.load %arg6[%131, %c0_41] : memref<16x64xi32, #tpu.memory_space<vmem>>, vector<1x64xi32>
    tpu.vector_store %arg6[%131, %c0_41], %130 {strides = array<i32>} : memref<16x64xi32, #tpu.memory_space<vmem>>, vector<1x64xi32>,
    %c2_i32_42 = arith.constant 2 : i32
    %c0_43 = arith.constant 0 : index
    %c0_44 = arith.constant 0 : index
    %133 = vector.load %arg6[%c0_43, %c0_44] : memref<16x64xi32, #tpu.memory_space<vmem>>, vector<16x64xi32>
    %c16_i32_45 = arith.constant 16 : i32
    %134 = vector.broadcast %c16_i32_45 : i32 to vector<16x64xi32>
    %135 = arith.shli %133, %134 : vector<16x64xi32>
    %136 = tpu.bitcast %135 : vector<16x64xi32> -> vector<16x64xf32>
    %c-65536_i32 = arith.constant -65536 : i32
    %137 = vector.broadcast %c-65536_i32 : i32 to vector<16x64xi32>
    %138 = arith.andi %133, %137 : vector<16x64xi32>
    %139 = tpu.bitcast %138 : vector<16x64xi32> -> vector<16x64xf32>
    %cst = arith.constant dense<0.000000e+00> : vector<16xf32>
    %140 = vector.multi_reduction <add>, %136, %cst [1] : vector<16x64xf32> to vector<16xf32>
    %141 = vector.shape_cast %140 : vector<16xf32> to vector<16x1xf32>
    %cst_46 = arith.constant dense<0.000000e+00> : vector<16xf32>
    %142 = vector.multi_reduction <add>, %139, %cst_46 [1] : vector<16x64xf32> to vector<16xf32>
    %143 = vector.shape_cast %142 : vector<16xf32> to vector<16x1xf32>
    %144 = arith.addf %141, %143 : vector<16x1xf32>
    %cst_47 = arith.constant 7.812500e-03 : f32
    %145 = vector.broadcast %cst_47 : f32 to vector<16x1xf32>
    %146 = arith.mulf %144, %145 : vector<16x1xf32>
    %147 = vector.broadcast %146 : vector<16x1xf32> to vector<16x64xf32>
    %148 = arith.subf %136, %147 : vector<16x64xf32>
    %149 = vector.broadcast %146 : vector<16x1xf32> to vector<16x64xf32>
    %150 = arith.subf %139, %149 : vector<16x64xf32>
    %151 = arith.mulf %148, %148 : vector<16x64xf32>
    %cst_48 = arith.constant dense<0.000000e+00> : vector<16xf32>
    %152 = vector.multi_reduction <add>, %151, %cst_48 [1] : vector<16x64xf32> to vector<16xf32>
    %153 = vector.shape_cast %152 : vector<16xf32> to vector<16x1xf32>
    %154 = arith.mulf %150, %150 : vector<16x64xf32>
    %cst_49 = arith.constant dense<0.000000e+00> : vector<16xf32>
    %155 = vector.multi_reduction <add>, %154, %cst_49 [1] : vector<16x64xf32> to vector<16xf32>
    %156 = vector.shape_cast %155 : vector<16xf32> to vector<16x1xf32>
    %157 = arith.addf %153, %156 : vector<16x1xf32>
    %cst_50 = arith.constant 7.812500e-03 : f32
    %158 = vector.broadcast %cst_50 : f32 to vector<16x1xf32>
    %159 = arith.mulf %157, %158 : vector<16x1xf32>
    %cst_51 = arith.constant 9.99999996E-13 : f32
    %160 = vector.broadcast %cst_51 : f32 to vector<16x1xf32>
    %161 = arith.addf %159, %160 : vector<16x1xf32>
    %162 = math.rsqrt %161 : vector<16x1xf32>
    %c0_52 = arith.constant 0 : index
    %c0_53 = arith.constant 0 : index
    %163 = vector.load %arg3[%c0_52, %c0_53] : memref<1x128xf32, #tpu.memory_space<vmem>>, vector<1x128xf32>
    %c0_54 = arith.constant 0 : index
    %c0_55 = arith.constant 0 : index
    %164 = vector.load %arg4[%c0_54, %c0_55] : memref<1x128xf32, #tpu.memory_space<vmem>>, vector<1x128xf32>
    %165 = vector.broadcast %162 : vector<16x1xf32> to vector<16x64xf32>
    %166 = arith.mulf %148, %165 : vector<16x64xf32>
    %167 = vector.extract_strided_slice %163 {offsets = [0, 0], sizes = [1, 64], strides = [1, 1]} : vector<1x128xf32> to vector<1x64xf32>
    %168 = vector.broadcast %167 : vector<1x64xf32> to vector<16x64xf32>
    %169 = arith.mulf %166, %168 : vector<16x64xf32>
    %170 = vector.extract_strided_slice %164 {offsets = [0, 0], sizes = [1, 64], strides = [1, 1]} : vector<1x128xf32> to vector<1x64xf32>
    %171 = vector.broadcast %170 : vector<1x64xf32> to vector<16x64xf32>
    %172 = arith.addf %169, %171 : vector<16x64xf32>
    %c0_56 = arith.constant 0 : index
    %c0_57 = arith.constant 0 : index
    %173 = vector.load %arg5[%c0_56, %c0_57] : memref<16x128xf32, #tpu.memory_space<vmem>>, vector<16x64xf32>
    tpu.vector_store %arg5[%c0_56, %c0_57], %172 {strides = array<i32>} : memref<16x128xf32, #tpu.memory_space<vmem>>, vector<16x64xf32>,
    %174 = vector.broadcast %162 : vector<16x1xf32> to vector<16x64xf32>
    %175 = arith.mulf %150, %174 : vector<16x64xf32>
    %176 = vector.extract_strided_slice %163 {offsets = [0, 64], sizes = [1, 64], strides = [1, 1]} : vector<1x128xf32> to vector<1x64xf32>
    %177 = vector.broadcast %176 : vector<1x64xf32> to vector<16x64xf32>
    %178 = arith.mulf %175, %177 : vector<16x64xf32>
    %179 = vector.extract_strided_slice %164 {offsets = [0, 64], sizes = [1, 64], strides = [1, 1]} : vector<1x128xf32> to vector<1x64xf32>
    %180 = vector.broadcast %179 : vector<1x64xf32> to vector<16x64xf32>
    %181 = arith.addf %178, %180 : vector<16x64xf32>
    %c0_58 = arith.constant 0 : index
    %c64 = arith.constant 64 : index
    %182 = vector.load %arg5[%c0_58, %c64] : memref<16x128xf32, #tpu.memory_space<vmem>>, vector<16x64xf32>
    tpu.vector_store %arg5[%c0_58, %c64], %181 {strides = array<i32>} : memref<16x128xf32, #tpu.memory_space<vmem>>, vector<16x64xf32>,
    return
  }
  func.func @transform_0(%arg0: i32, %arg1: memref<16xi32, #tpu.memory_space<smem>>) -> (i32, i32) {
    %c0_i32 = arith.constant 0 : i32
    %c0_i32_0 = arith.constant 0 : i32
    %c0_i32_1 = arith.constant 0 : i32
    return %c0_i32, %c0_i32_0 : i32, i32
  }
  func.func @transform_1(%arg0: i32, %arg1: memref<16xi32, #tpu.memory_space<smem>>) -> (i32, i32) {
    %c0_i32 = arith.constant 0 : i32
    %c0_i32_0 = arith.constant 0 : i32
    %c0_i32_1 = arith.constant 0 : i32
    return %c0_i32, %c0_i32_0 : i32, i32
  }
  func.func @transform_2(%arg0: i32, %arg1: memref<16xi32, #tpu.memory_space<smem>>) -> (i32, i32) {
    %c0_i32 = arith.constant 0 : i32
    %c0_i32_0 = arith.constant 0 : i32
    %c0_i32_1 = arith.constant 0 : i32
    return %c0_i32, %c0_i32_0 : i32, i32
  }
  func.func @transform_3(%arg0: i32, %arg1: memref<16xi32, #tpu.memory_space<smem>>) -> (i32, i32) {
    %c0_i32 = arith.constant 0 : i32
    %c0_i32_0 = arith.constant 0 : i32
    return %arg0, %c0_i32 : i32, i32
  }
}

</mosaic_0001>

<bundles_post_ra>
// kernel: tpu_custom_call.1
= control target key start
LH: loop header
LB: loop body
LE: loop exit
PB: predicated region body
PF: predicated region fallthrough
CT: control target
= control target key end

     0   :  { %s373_s15 = smov [#allocation4]   ;;  %s455_s0 = inlined_call_operand.hbm [shape: s32[16], index: 0, kind: input, shape index: {}]   ;;  %s456_s1 = inlined_call_operand.hbm [shape: u32[32,64], index: 1, kind: input, shape index: {}]   ;;  %s457_s2 = inlined_call_operand.vmem [shape: f32[1,128], index: 2, kind: input, shape index: {}]   ;;  %s458_s3 = inlined_call_operand.vmem [shape: f32[1,128], index: 3, kind: input, shape index: {}]   ;;  %s459_s4 = inlined_call_operand.hbm [shape: f32[16,128], index: 4, kind: output, shape index: {}]  }
   0x1   :  { %10 = dma.hbm_to_smem %s455_s0, 16, %s373_s15, [#allocation3] }
   0x2   :  { %367 = dma.done.wait [#allocation3], 16 }
   0x3   :  { %368 = vsyncadd [#allocation3], 4294967280 }
   0x4   :  { %12 = sfence }
   0x5   :  { %13 = vsyncpa [#allocation6], 0 }
   0x6   :  { %14 = vsyncpa [#allocation7], 0  ;;  %s374_s18 = smov [#allocation5]  }
   0x7   :  { %s20_s19 = sshll.u32 %s374_s18, 4  ;;  %s21_s19 = int_to_ptr.vmem [resolvable:$true] %s20_s19 }
   0x8   :  { %s335_s20 = scalar_lea.vmem %s21_s19, 512  ;;  %p340_p1 = scmp.lt.s32.totalorder %s21_s19, %s21_s19 }
   0x9   :  { %p336_p0 = scmp.ne.s32.totalorder %s21_s19, %s335_s20  ;;  %p341_p2 = scmp.lt.s32.totalorder %s335_s20, %s335_s20 }
   0xb   :  { %p342_p3 = por %p341_p2, %p340_p1 }
   0xd   :  { %p343_p4 = pnand %p342_p3, %p336_p0 }
   0xf   :  { %346 = shalt.err (!%p343_p4)
}
  0x10   :  { %s375_s21 = smov 128   ;;  %s376_s22 = smov 8  }
  0x11   :  { %26 = dma.hbm_to_vmem [thread:$0]  %s456_s1, 512, %s21_s19, [#allocation6], %s375_s21, %s375_s21, %s376_s22  }
  0x12   :  { %369 = dma.done.wait [#allocation6], 512  }
  0x13   :  { %370 = vsyncadd [#allocation6], 4294966784  ;;  %s36_s24 = sld [smem:[#allocation4]]  ;;  %vm39_vm0 = vcmask 516096   ;;  %vm155_vm1 = vcmask 523264   ;;  %vm242_vm2 = vcmask 1048064  }
  0x14   :  { %s292_s25 = sld [smem:[#allocation4 + $0x1]]  ;;  %v307_v46 = vld [vmem:[%s457_s2] ss:$0 sm:$0xff]  ;;  %s378_s2 = smov [#allocation8]  }
  0x15   :  { %s293_s26 = sld [smem:[#allocation4 + $0x2]]  ;;  %v308_v47 = vld [vmem:[%s458_s3] ss:$0 sm:$0xff]  ;;  %s250_s3 = sshll.u32 %s378_s2, 4  ;;  %s251_s3 = int_to_ptr.vmem [resolvable:$true] %s250_s3 }
  0x16   :  { %s294_s27 = sld [smem:[#allocation4 + $0x3]]  ;;  %p352_p6 = scmp.lt.s32.totalorder %s251_s3, %s251_s3 }
  0x17   :  { %s295_s28 = sld [smem:[#allocation4 + $0x4]] }
  0x18   :  { %s296_s29 = sld [smem:[#allocation4 + $0x5]] }
  0x19   :  { %s297_s30 = sld [smem:[#allocation4 + $0x6]]  ;;  %s37_s5 = scalar_lea.vmem [#allocation5], %s36_s24 }
  0x1a   :  { %v38_v0 = vld [vmem:[%s37_s5] sm:$0x1]  ;;  %s298_s6 = sld [smem:[#allocation4 + $0x7]]  ;;  %s44_s7 = scalar_lea.vmem [#allocation5], %s292_s25 }
  0x1b   :  { %40 = vst.msk [vmem:[#allocation2] sm:$0x1] %vm39_vm0, %v38_v0  ;;  %v45_v1 = vld [vmem:[%s44_s7] sm:$0x1]  ;;  %s299_s8 = sld [smem:[#allocation4 + $0x8]]  ;;  %s51_s1 = scalar_lea.vmem [#allocation5], %s293_s26 }
  0x1c   :  { %47 = vst.msk [vmem:[#allocation2 + $0x1] sm:$0x1] %vm39_vm0, %v45_v1  ;;  %v52_v2 = vld [vmem:[%s51_s1] sm:$0x1]  ;;  %s300_s9 = sld [smem:[#allocation4 + $0x9]]  ;;  %s58_s10 = scalar_lea.vmem [#allocation5], %s294_s27 }
  0x1d   :  { %54 = vst.msk [vmem:[#allocation2 + $0x2] sm:$0x1] %vm39_vm0, %v52_v2  ;;  %v59_v3 = vld [vmem:[%s58_s10] sm:$0x1]  ;;  %s301_s11 = sld [smem:[#allocation4 + $0xa]]  ;;  %s65_s12 = scalar_lea.vmem [#allocation5], %s295_s28 }
  0x1e   :  { %61 = vst.msk [vmem:[#allocation2 + $0x3] sm:$0x1] %vm39_vm0, %v59_v3  ;;  %v66_v4 = vld [vmem:[%s65_s12] sm:$0x1]  ;;  %s302_s13 = sld [smem:[#allocation4 + $0xb]]  ;;  %s72_s14 = scalar_lea.vmem [#allocation5], %s296_s29 }
  0x1f   :  { %68 = vst.msk [vmem:[#allocation2 + $0x4] sm:$0x1] %vm39_vm0, %v66_v4  ;;  %v73_v5 = vld [vmem:[%s72_s14] sm:$0x1]  ;;  %s303_s15 = sld [smem:[#allocation4 + $0xc]]  ;;  %s79_s16 = scalar_lea.vmem [#allocation5], %s297_s30 }
  0x20   :  { %75 = vst.msk [vmem:[#allocation2 + $0x5] sm:$0x1] %vm39_vm0, %v73_v5  ;;  %v80_v6 = vld [vmem:[%s79_s16] sm:$0x1]  ;;  %s304_s17 = sld [smem:[#allocation4 + $0xd]]  ;;  %s86_s18 = scalar_lea.vmem [#allocation5], %s298_s6 }
  0x21   :  { %82 = vst.msk [vmem:[#allocation2 + $0x6] sm:$0x1] %vm39_vm0, %v80_v6  ;;  %v87_v7 = vld [vmem:[%s86_s18] sm:$0x1]  ;;  %s305_s19 = sld [smem:[#allocation4 + $0xe]]  ;;  %s92_s20 = scalar_lea.vmem [#allocation5], %s299_s8 }
  0x22   :  { %89 = vst.msk [vmem:[#allocation2 + $0x7] sm:$0x1] %vm39_vm0, %v87_v7  ;;  %v93_v8 = vld [vmem:[%s92_s20] sm:$0x1]  ;;  %s306_s0 = sld [smem:[#allocation4 + $0xf]]  ;;  %s99_s23 = scalar_lea.vmem [#allocation5], %s300_s9 }
  0x23   :  { %95 = vst.msk [vmem:[#allocation2 + $0x8] sm:$0x1] %vm39_vm0, %v93_v8  ;;  %v100_v9 = vld [vmem:[%s99_s23] sm:$0x1]  ;;  %s106_s24 = scalar_lea.vmem [#allocation5], %s301_s11  ;;  %s377_s6 = smov 64  }
  0x24   :  { %102 = vst.msk [vmem:[#allocation2 + $0x9] sm:$0x1] %vm39_vm0, %v100_v9  ;;  %v107_v10 = vld [vmem:[%s106_s24] sm:$0x1]  ;;  %s113_s25 = scalar_lea.vmem [#allocation5], %s302_s13  ;;  %s347_s1 = scalar_lea.vmem %s251_s3, 256 }
  0x25   :  { %109 = vst.msk [vmem:[#allocation2 + $0xa] sm:$0x1] %vm39_vm0, %v107_v10  ;;  %v114_v11 = vld [vmem:[%s113_s25] sm:$0x1]  ;;  %s120_s26 = scalar_lea.vmem [#allocation5], %s303_s15  ;;  %p348_p5 = scmp.ne.s32.totalorder %s251_s3, %s347_s1 }
  0x26   :  { %116 = vst.msk [vmem:[#allocation2 + $0xb] sm:$0x1] %vm39_vm0, %v114_v11  ;;  %v121_v12 = vld [vmem:[%s120_s26] sm:$0x1]  ;;  %s127_s27 = scalar_lea.vmem [#allocation5], %s304_s17  ;;  %p353_p7 = scmp.lt.s32.totalorder %s347_s1, %s347_s1 }
  0x27   :  { %123 = vst.msk [vmem:[#allocation2 + $0xc] sm:$0x1] %vm39_vm0, %v121_v12  ;;  %v128_v13 = vld [vmem:[%s127_s27] sm:$0x1]  ;;  %s134_s28 = scalar_lea.vmem [#allocation5], %s305_s19 }
  0x28   :  { %130 = vst.msk [vmem:[#allocation2 + $0xd] sm:$0x1] %vm39_vm0, %v128_v13  ;;  %v135_v14 = vld [vmem:[%s134_s28] sm:$0x1]  ;;  %s141_s29 = scalar_lea.vmem [#allocation5], %s306_s0  ;;  %p354_p8 = por %p353_p7, %p352_p6 }
  0x29   :  { %v145_v15 = vld [vmem:[#allocation2] sm:$0xff]  ;;  %137 = vst.msk [vmem:[#allocation2 + $0xe] sm:$0x1] %vm39_vm0, %v135_v14 }
  0x2a   :  { %v142_v16 = vld [vmem:[%s141_s29] sm:$0x1]  ;;  %v151_v17 = vand.u32 4294901760, %v145_v15  ;;  %v147_v18 = vshll.u32 %v145_v15, 16  ;;  %p355_p9 = pnand %p354_p8, %p348_p5 }
  0x2b   :  { %144 = vst.msk [vmem:[#allocation2 + $0xf] sm:$0x1] %vm39_vm0, %v142_v16 }
  0x2c   :  { %v162_v19 = vsel %vm155_vm1, %v151_v17, 0.0  ;;  %v156_v20 = vsel %vm155_vm1, %v147_v18, 0.0 }
  0x2d   :  { %163 = vadd.xlane.f32.xlu1 %v162_v19  ;;  %157 = vadd.xlane.f32.xlu0 %v156_v20 }
  0x32   :  { %v146_v21 = vld [vmem:[#allocation2 + $0x8] sm:$0xff] }
  0x33   :  { %v152_v22 = vand.u32 4294901760, %v146_v21  ;;  %v148_v23 = vshll.u32 %v146_v21, 16 }
  0x35   :  { %v165_v24 = vsel %vm155_vm1, %v152_v22, 0.0  ;;  %v159_v25 = vsel %vm155_vm1, %v148_v23, 0.0 }
  0x36   :  { %166 = vadd.xlane.f32.xlu1 %v165_v24  ;;  %160 = vadd.xlane.f32.xlu0 %v159_v25 }
  0xb6   :  { %v164_v26 = vpop.xlane.xlu1 %163  ;;  %v158_v27 = vpop.xlane.xlu0 %157 }
  0xb7   :  { %v168_v28 = vadd.f32 %v164_v26, %v158_v27 }
  0xb9   :  { %v170_v29 = vmul.f32 0.0078125, %v168_v28 }
  0xbb   :  { %v172_v30 = vsub.f32 %v147_v18, %v170_v29  ;;  %v174_v31 = vsub.f32 %v151_v17, %v170_v29 }
  0xbd   :  { %v176_v32 = vmul.f32 %v172_v30, %v172_v30  ;;  %v184_v37 = vmul.f32 %v174_v31, %v174_v31 }
  0xbf   :  { %v167_v33 = vpop.xlane.xlu1 %166  ;;  %v161_v34 = vpop.xlane.xlu0 %160  ;;  %v178_v36 = vsel %vm155_vm1, %v176_v32, 0.0  ;;  %v186_v41 = vsel %vm155_vm1, %v184_v37, 0.0 }
  0xc0   :  { %v169_v35 = vadd.f32 %v167_v33, %v161_v34  ;;  %179 = vadd.xlane.f32.xlu0 %v178_v36 }
  0xc2   :  { %v171_v38 = vmul.f32 0.0078125, %v169_v35 }
  0xc4   :  { %v173_v39 = vsub.f32 %v148_v23, %v171_v38  ;;  %v175_v40 = vsub.f32 %v152_v22, %v171_v38  ;;  %187 = vadd.xlane.f32.xlu0 %v186_v41 }
  0xc6   :  { %v177_v42 = vmul.f32 %v173_v39, %v173_v39  ;;  %v185_v44 = vmul.f32 %v175_v40, %v175_v40 }
  0xc8   :  { %v181_v43 = vsel %vm155_vm1, %v177_v42, 0.0  ;;  %v189_v45 = vsel %vm155_vm1, %v185_v44, 0.0 }
  0xc9   :  { %182 = vadd.xlane.f32.xlu1 %v181_v43 }
  0xcd   :  { %190 = vadd.xlane.f32.xlu1 %v189_v45 }
  0xda   :  { %224 = vrot.lane.b32.xlu0 %v307_v46, %s377_s6 }
  0xde   :  { %229 = vrot.lane.b32.xlu1 %v308_v47, %s377_s6 }
 0x149   :  { %v180_v48 = vpop.xlane.xlu0 %179 }
 0x14d   :  { %v188_v49 = vpop.xlane.xlu0 %187 }
 0x14e   :  { %v192_v50 = vadd.f32 %v188_v49, %v180_v48 }
 0x150   :  { %v194_v51 = vmul.f32 0.0078125, %v192_v50 }
 0x151   :  { %v225_v59 = vpop.permute.xlu0 %224 }
 0x152   :  { %v183_v52 = vpop.xlane.xlu1 %182  ;;  %v196_v53 = vadd.f32 1e-12, %v194_v51 }
 0x154   :  { %315 = vrsqrt.f32 %v196_v53 }
 0x156   :  { %v191_v54 = vpop.xlane.xlu1 %190 }
 0x157   :  { %v193_v55 = vadd.f32 %v191_v54, %v183_v52 }
 0x159   :  { %v195_v56 = vmul.f32 0.0078125, %v193_v55 }
 0x15a   :  { %v230_v62 = vpop.permute.xlu1 %229 }
 0x15b   :  { %v197_v57 = vadd.f32 1e-12, %v195_v56 }
 0x15d   :  { %317 = vrsqrt.f32 %v197_v57 }
 0x161   :  { %v316_v58 = vpop.eup %315 }
 0x162   :  { %v222_v60 = vmul.f32 %v316_v58, %v174_v31  ;;  %v202_v61 = vmul.f32 %v316_v58, %v172_v30 }
 0x164   :  { %v227_v63 = vmul.f32 %v225_v59, %v222_v60  ;;  %v210_v0 = vmul.f32 %v307_v46, %v202_v61 }
 0x166   :  { %v232_v1 = vadd.f32 %v230_v62, %v227_v63  ;;  %v218_v2 = vadd.f32 %v308_v47, %v210_v0 }
 0x168   :  { %236 = vrot.lane.b32.xlu1 %v232_v1, %s377_s6  ;;  %220 = vst.msk [vmem:[#allocation8] sm:$0xff] %vm155_vm1, %v218_v2 }
 0x16a   :  { %v318_v3 = vpop.eup %317 }
 0x16b   :  { %v223_v4 = vmul.f32 %v318_v3, %v175_v40  ;;  %v203_v5 = vmul.f32 %v318_v3, %v173_v39 }
 0x16d   :  { %v228_v6 = vmul.f32 %v225_v59, %v223_v4  ;;  %v211_v7 = vmul.f32 %v307_v46, %v203_v5 }
 0x16f   :  { %v233_v8 = vadd.f32 %v230_v62, %v228_v6  ;;  %v219_v9 = vadd.f32 %v308_v47, %v211_v7 }
 0x171   :  { %238 = vrot.lane.b32.xlu1 %v233_v8, %s377_s6  ;;  %221 = vst.msk [vmem:[#allocation8 + $0x8] sm:$0xff] %vm155_vm1, %v219_v9 }
 0x1da   :  { %v237_v10 = vpop.permute.xlu1 %236 }
 0x1db   :  { %243 = vst.msk [vmem:[#allocation8] sm:$0xff] %vm242_vm2, %v237_v10 }
 0x1e3   :  { %v239_v11 = vpop.permute.xlu1 %238 }
 0x1e4   :  { %244 = vst.msk [vmem:[#allocation8 + $0x8] sm:$0xff] %vm242_vm2, %v239_v11 }
 0x1e5   :  { %358 = shalt.err (!%p355_p9)
}
 0x1e6   :  { %256 = dma.vmem_to_hbm [thread:$0]  %s251_s3, 256, %s459_s4, [#allocation7], %s375_s21, %s375_s21, %s376_s22  }
 0x1e7   :  { %371 = dma.done.wait [#allocation7], 256  }
 0x1e8   :  { %372 = vsyncadd [#allocation7], 4294967040 }
 0x1e9   :  { %260 = vsyncpa [#allocation6], 1 }
 0x1ea   :  { %261 = vsyncpa [#allocation7], 1 }

</bundles_post_ra>
